<compile_context>
chip_gen: v7x
topology: tpu7x:2x2x1
jax: 0.10.0
libtpu: 0.0.40
codegen_flags: <defaults>
</compile_context>

<pallas_src>
import jax
import jax.numpy as jnp
from jax.experimental import pallas as pl
from jax.experimental.pallas import tpu as pltpu

NEG_SLOPE = 0.01  # torch.nn.LeakyReLU default


def mlp_kernel(x_ref,
               w1_ref, b1_ref,
               w2_ref, b2_ref,
               w3_ref, b3_ref,
               w4_ref, b4_ref,
               w5_ref, b5_ref,
               o_ref):
    """Fused 5-layer MLP on one batch tile.

    bf16 MXU operands, f32 accumulation.  The dtype of each hidden bias ref
    decides whether the bias-add / LeakyReLU run in bf16 (v6e/v7x) or f32
    (v5x).  The final layer always adds an f32 bias and stores f32.
    """

    def hidden_layer(h, w_ref, b_ref):
        acc = jnp.dot(h, w_ref[...], preferred_element_type=jnp.float32)
        y = acc.astype(b_ref.dtype) + b_ref[...]          # bias add (f32 or bf16)
        y = jnp.maximum(y, NEG_SLOPE * y)                 # LeakyReLU: mul+max
        return y.astype(w_ref.dtype)                      # bf16 for next MXU op

    # In-kernel f32 -> bf16 cast of the activation tile (saves an HBM pass).
    h = x_ref[...].astype(w1_ref.dtype)
    h = hidden_layer(h, w1_ref, b1_ref)
    h = hidden_layer(h, w2_ref, b2_ref)
    h = hidden_layer(h, w3_ref, b3_ref)
    h = hidden_layer(h, w4_ref, b4_ref)
    y = jnp.dot(h, w5_ref[...], preferred_element_type=jnp.float32) + b5_ref[...]
    o_ref[...] = y.astype(o_ref.dtype)


def _num_tensorcores():
    """Best-effort TC count per chip (v7x = 2, everything else = 1)."""
    try:
        kind = jax.devices()[0].device_kind.lower()
    except Exception:
        return 1
    return 2 if "v7" in kind else 1


def _has_bf16_vpu():
    """v6e / v7x have a bf16 VALU; v2-v5 do not (keep f32 elementwise there)."""
    try:
        kind = jax.devices()[0].device_kind.lower()
    except Exception:
        return False
    return not any(tag in kind for tag in ("v2", "v3", "v4", "v5"))


def _choose_tile_b(B, num_cores):
    """Batch-tile heuristic.

    Small B: one step (launch overhead dominates anyway).  Large B: >=4 steps
    per v7x TensorCore / >=2 steps on single-TC chips, tiles capped at 1024
    rows (measured 85-86% of HBM roofline at 512-1024), multiple of 8.
    """
    if B <= 64:
        return B
    steps = max(2, 4 * num_cores)
    tile = (pl.cdiv(B, steps) // 8) * 8
    return max(8, min(1024, tile))


def prepare_params(params, *, elementwise_bf16=None):
    """One-time conversion of f32 (W [in,out], b [1,out]) params for the kernel.

    Hoisted out of the per-call wrapper so the small-batch / latency path does
    no array prep.  Hidden-layer biases are bf16 on chips with a bf16 VALU,
    f32 otherwise; the final bias is always f32.
    """
    if elementwise_bf16 is None:
        elementwise_bf16 = _has_bf16_vpu()
    hidden_bias_dtype = jnp.bfloat16 if elementwise_bf16 else jnp.float32

    n_layers = len(params)
    prepared = []
    for li, (w, b) in enumerate(params):
        w_bf = jnp.asarray(w, jnp.bfloat16)
        b_dtype = jnp.float32 if li == n_layers - 1 else hidden_bias_dtype
        prepared.append((w_bf, jnp.asarray(b, b_dtype)))
    return prepared


def kernel_encoder_forward(x, prepared_params, *, tile_b=None):
    """x: [B, input_dim] f32.  prepared_params: output of prepare_params().

    Note: if you have many independent encoder calls at tiny batch, stack them
    along the batch axis and make one call — launch overhead dominates at B~8.
    """
    B, in_dim = x.shape
    out_dim = prepared_params[-1][0].shape[1]

    if tile_b is None:
        tile_b = _choose_tile_b(B, _num_tensorcores())
    tile_b = min(tile_b, B)
    grid = (pl.cdiv(B, tile_b),)

    flat = []
    in_specs = [pl.BlockSpec((tile_b, in_dim), lambda i: (i, 0))]
    for (w, b) in prepared_params:
        flat.extend([w, b])
        # Grid-invariant residents (same block every grid step, ~90 KB total).
        in_specs.append(pl.BlockSpec(w.shape, lambda i: (0, 0)))
        in_specs.append(pl.BlockSpec(b.shape, lambda i: (0, 0)))

    # Advisory cost model so XLA schedules neighbors around the custom call.
    dims = [in_dim] + [w.shape[1] for (w, _) in prepared_params]
    flops = 2 * B * sum(dims[i] * dims[i + 1] for i in range(len(dims) - 1))
    weight_bytes = sum(int(a.size) * a.dtype.itemsize for a in flat)
    bytes_accessed = int(x.size) * 4 + B * out_dim * 4 + weight_bytes
    cost = pl.CostEstimate(flops=int(flops), transcendentals=0,
                           bytes_accessed=int(bytes_accessed))

    # out_dim equals the full last dim of the output array, so an unpadded
    # (tile_b, out_dim) block is legal -> no zero-padding, no wrapper slice.
    return pl.pallas_call(
        mlp_kernel,
        out_shape=jax.ShapeDtypeStruct((B, out_dim), jnp.float32),
        grid_spec=pltpu.PrefetchScalarGridSpec(
            num_scalar_prefetch=0,
            grid=grid,
            in_specs=in_specs,
            out_specs=pl.BlockSpec((tile_b, out_dim), lambda i: (i, 0)),
        ),
        compiler_params=pltpu.CompilerParams(
            dimension_semantics=("parallel",),
            vmem_limit_bytes=32 * 1024 * 1024,
        ),
        cost_estimate=cost,
    )(x, *flat)


def init_params(key, input_dim, output_dim):
    """Deterministic init mirroring nn.Linear shapes (stored transposed, f32)."""
    dims = [input_dim, 64, 128, 128, 128, output_dim]
    params = []
    for i in range(len(dims) - 1):
        fan_in, fan_out = dims[i], dims[i + 1]
        key, kw, kb = jax.random.split(key, 3)
        bound = 1.0 / jnp.sqrt(jnp.float32(fan_in))
        # PyTorch Linear stores W as (out, in); we store W.T = (in, out).
        w = jax.random.uniform(kw, (fan_in, fan_out), jnp.float32, -bound, bound)
        b = jax.random.uniform(kb, (1, fan_out), jnp.float32, -bound, bound)
        params.append((w, b))
    return params


def reference_forward(x, params):
    """Pure-JAX f32 reference of the PyTorch module."""
    h = x
    for i, (w, b) in enumerate(params):
        h = h @ w + b
        if i < len(params) - 1:
            h = jnp.where(h > 0, h, NEG_SLOPE * h)
    return h


if __name__ == "__main__":
    key = jax.random.PRNGKey(0)
    input_dim, output_dim = 32, 16
    k_p, k_x1, k_x2 = jax.random.split(key, 3)
    params = init_params(k_p, input_dim, output_dim)
    prepared = prepare_params(params)          # one-time weight prep (hoisted)

    # bf16 MXU operands (and bf16 elementwise on v6e/v7x) with f32
    # accumulation -> small drift vs the f32 reference.
    ATOL, RTOL = 2e-2, 5e-2

    # 1) tiny batch (single-step grid), matches the module's small-encoder use.
    x_small = jax.random.normal(k_x1, (8, input_dim), jnp.float32)
    out_small = jax.block_until_ready(kernel_encoder_forward(x_small, prepared))
    ref_small = reference_forward(x_small, params)
    assert out_small.shape == (8, output_dim)
    assert jnp.allclose(out_small, ref_small, atol=ATOL, rtol=RTOL), "mismatch (B=8)"

    # 2) multi-step "parallel" grid with a partial last block (exercises the
    #    pipelined / batch-tiled path).
    x_big = jax.random.normal(k_x2, (200, input_dim), jnp.float32)
    out_big = jax.block_until_ready(kernel_encoder_forward(x_big, prepared))
    ref_big = reference_forward(x_big, params)
    assert out_big.shape == (200, output_dim)
    assert jnp.allclose(out_big, ref_big, atol=ATOL, rtol=RTOL), "mismatch (B=200)"

    print("KERNEL_OK")
</pallas_src>

<mosaic_0001>
module attributes {stable_mosaic.version = 11 : i64} {
  func.func @mlp_kernel(%arg0: i32, %arg1: memref<8x32xf32, #tpu.memory_space<vmem>>, %arg2: memref<32x64xbf16, #tpu.memory_space<vmem>>, %arg3: memref<1x64xbf16, #tpu.memory_space<vmem>>, %arg4: memref<64x128xbf16, #tpu.memory_space<vmem>>, %arg5: memref<1x128xbf16, #tpu.memory_space<vmem>>, %arg6: memref<128x128xbf16, #tpu.memory_space<vmem>>, %arg7: memref<1x128xbf16, #tpu.memory_space<vmem>>, %arg8: memref<128x128xbf16, #tpu.memory_space<vmem>>, %arg9: memref<1x128xbf16, #tpu.memory_space<vmem>>, %arg10: memref<128x16xbf16, #tpu.memory_space<vmem>>, %arg11: memref<1x16xf32, #tpu.memory_space<vmem>>, %arg12: memref<8x16xf32, #tpu.memory_space<vmem>>) attributes {dimension_semantics = [#tpu.dimension_semantics<parallel>], iteration_bounds = array<i64: 1>, scalar_prefetch = 0 : i64, scratch_operands = 0 : i64, tpu.core_type = #tpu.core_type<tc>, window_params = [{transform_indices = @transform_0, window_bounds = array<i64: 8, 32>}, {pipeline_mode = #tpu.pipeline_mode<synchronous>, transform_indices = @transform_1, window_bounds = array<i64: 32, 64>}, {pipeline_mode = #tpu.pipeline_mode<synchronous>, transform_indices = @transform_2, window_bounds = array<i64: 1, 64>}, {pipeline_mode = #tpu.pipeline_mode<synchronous>, transform_indices = @transform_3, window_bounds = array<i64: 64, 128>}, {pipeline_mode = #tpu.pipeline_mode<synchronous>, transform_indices = @transform_4, window_bounds = array<i64: 1, 128>}, {pipeline_mode = #tpu.pipeline_mode<synchronous>, transform_indices = @transform_5, window_bounds = array<i64: 128, 128>}, {pipeline_mode = #tpu.pipeline_mode<synchronous>, transform_indices = @transform_6, window_bounds = array<i64: 1, 128>}, {pipeline_mode = #tpu.pipeline_mode<synchronous>, transform_indices = @transform_7, window_bounds = array<i64: 128, 128>}, {pipeline_mode = #tpu.pipeline_mode<synchronous>, transform_indices = @transform_8, window_bounds = array<i64: 1, 128>}, {pipeline_mode = #tpu.pipeline_mode<synchronous>, transform_indices = @transform_9, window_bounds = array<i64: 128, 16>}, {pipeline_mode = #tpu.pipeline_mode<synchronous>, transform_indices = @transform_10, window_bounds = array<i64: 1, 16>}, {transform_indices = @transform_11, window_bounds = array<i64: 8, 16>}]} {
    %c0 = arith.constant 0 : index
    %c0_0 = arith.constant 0 : index
    %0 = vector.load %arg1[%c0, %c0_0] : memref<8x32xf32, #tpu.memory_space<vmem>>, vector<8x32xf32>
    %1 = arith.truncf %0 : vector<8x32xf32> to vector<8x32xbf16>
    %c0_1 = arith.constant 0 : index
    %c0_2 = arith.constant 0 : index
    %2 = vector.load %arg2[%c0_1, %c0_2] : memref<32x64xbf16, #tpu.memory_space<vmem>>, vector<32x64xbf16>
    %cst = arith.constant dense<0.000000e+00> : vector<8x64xf32>
    %3 = tpu.matmul %1, %2, %cst {dimension_numbers = #tpu.dot_dimension_numbers<[1], [0], [0], [1], [0, 0, 1, 1], [], []>} : vector<8x32xbf16>, vector<32x64xbf16>, vector<8x64xf32> -> vector<8x64xf32>
    %4 = arith.truncf %3 : vector<8x64xf32> to vector<8x64xbf16>
    %c0_3 = arith.constant 0 : index
    %c0_4 = arith.constant 0 : index
    %5 = vector.load %arg3[%c0_3, %c0_4] : memref<1x64xbf16, #tpu.memory_space<vmem>>, vector<1x64xbf16>
    %6 = vector.broadcast %5 : vector<1x64xbf16> to vector<8x64xbf16>
    %7 = arith.addf %4, %6 : vector<8x64xbf16>
    %cst_5 = arith.constant 1.000980e-02 : bf16
    %8 = vector.broadcast %cst_5 : bf16 to vector<8x64xbf16>
    %9 = arith.mulf %8, %7 : vector<8x64xbf16>
    %10 = arith.maximumf %7, %9 : vector<8x64xbf16>
    %c0_6 = arith.constant 0 : index
    %c0_7 = arith.constant 0 : index
    %11 = vector.load %arg4[%c0_6, %c0_7] : memref<64x128xbf16, #tpu.memory_space<vmem>>, vector<64x128xbf16>
    %cst_8 = arith.constant dense<0.000000e+00> : vector<8x128xf32>
    %12 = tpu.matmul %10, %11, %cst_8 {dimension_numbers = #tpu.dot_dimension_numbers<[1], [0], [0], [1], [0, 0, 1, 1], [], []>} : vector<8x64xbf16>, vector<64x128xbf16>, vector<8x128xf32> -> vector<8x128xf32>
    %13 = arith.truncf %12 : vector<8x128xf32> to vector<8x128xbf16>
    %c0_9 = arith.constant 0 : index
    %c0_10 = arith.constant 0 : index
    %14 = vector.load %arg5[%c0_9, %c0_10] : memref<1x128xbf16, #tpu.memory_space<vmem>>, vector<1x128xbf16>
    %15 = vector.broadcast %14 : vector<1x128xbf16> to vector<8x128xbf16>
    %16 = arith.addf %13, %15 : vector<8x128xbf16>
    %cst_11 = arith.constant 1.000980e-02 : bf16
    %17 = vector.broadcast %cst_11 : bf16 to vector<8x128xbf16>
    %18 = arith.mulf %17, %16 : vector<8x128xbf16>
    %19 = arith.maximumf %16, %18 : vector<8x128xbf16>
    %c0_12 = arith.constant 0 : index
    %c0_13 = arith.constant 0 : index
    %20 = vector.load %arg6[%c0_12, %c0_13] : memref<128x128xbf16, #tpu.memory_space<vmem>>, vector<128x128xbf16>
    %cst_14 = arith.constant dense<0.000000e+00> : vector<8x128xf32>
    %21 = tpu.matmul %19, %20, %cst_14 {dimension_numbers = #tpu.dot_dimension_numbers<[1], [0], [0], [1], [0, 0, 1, 1], [], []>} : vector<8x128xbf16>, vector<128x128xbf16>, vector<8x128xf32> -> vector<8x128xf32>
    %22 = arith.truncf %21 : vector<8x128xf32> to vector<8x128xbf16>
    %c0_15 = arith.constant 0 : index
    %c0_16 = arith.constant 0 : index
    %23 = vector.load %arg7[%c0_15, %c0_16] : memref<1x128xbf16, #tpu.memory_space<vmem>>, vector<1x128xbf16>
    %24 = vector.broadcast %23 : vector<1x128xbf16> to vector<8x128xbf16>
    %25 = arith.addf %22, %24 : vector<8x128xbf16>
    %cst_17 = arith.constant 1.000980e-02 : bf16
    %26 = vector.broadcast %cst_17 : bf16 to vector<8x128xbf16>
    %27 = arith.mulf %26, %25 : vector<8x128xbf16>
    %28 = arith.maximumf %25, %27 : vector<8x128xbf16>
    %c0_18 = arith.constant 0 : index
    %c0_19 = arith.constant 0 : index
    %29 = vector.load %arg8[%c0_18, %c0_19] : memref<128x128xbf16, #tpu.memory_space<vmem>>, vector<128x128xbf16>
    %cst_20 = arith.constant dense<0.000000e+00> : vector<8x128xf32>
    %30 = tpu.matmul %28, %29, %cst_20 {dimension_numbers = #tpu.dot_dimension_numbers<[1], [0], [0], [1], [0, 0, 1, 1], [], []>} : vector<8x128xbf16>, vector<128x128xbf16>, vector<8x128xf32> -> vector<8x128xf32>
    %31 = arith.truncf %30 : vector<8x128xf32> to vector<8x128xbf16>
    %c0_21 = arith.constant 0 : index
    %c0_22 = arith.constant 0 : index
    %32 = vector.load %arg9[%c0_21, %c0_22] : memref<1x128xbf16, #tpu.memory_space<vmem>>, vector<1x128xbf16>
    %33 = vector.broadcast %32 : vector<1x128xbf16> to vector<8x128xbf16>
    %34 = arith.addf %31, %33 : vector<8x128xbf16>
    %cst_23 = arith.constant 1.000980e-02 : bf16
    %35 = vector.broadcast %cst_23 : bf16 to vector<8x128xbf16>
    %36 = arith.mulf %35, %34 : vector<8x128xbf16>
    %37 = arith.maximumf %34, %36 : vector<8x128xbf16>
    %c0_24 = arith.constant 0 : index
    %c0_25 = arith.constant 0 : index
    %38 = vector.load %arg10[%c0_24, %c0_25] : memref<128x16xbf16, #tpu.memory_space<vmem>>, vector<128x16xbf16>
    %cst_26 = arith.constant dense<0.000000e+00> : vector<8x16xf32>
    %39 = tpu.matmul %37, %38, %cst_26 {dimension_numbers = #tpu.dot_dimension_numbers<[1], [0], [0], [1], [0, 0, 1, 1], [], []>} : vector<8x128xbf16>, vector<128x16xbf16>, vector<8x16xf32> -> vector<8x16xf32>
    %c0_27 = arith.constant 0 : index
    %c0_28 = arith.constant 0 : index
    %40 = vector.load %arg11[%c0_27, %c0_28] : memref<1x16xf32, #tpu.memory_space<vmem>>, vector<1x16xf32>
    %41 = vector.broadcast %40 : vector<1x16xf32> to vector<8x16xf32>
    %42 = arith.addf %39, %41 : vector<8x16xf32>
    %c0_29 = arith.constant 0 : index
    %c0_30 = arith.constant 0 : index
    %43 = vector.load %arg12[%c0_29, %c0_30] : memref<8x16xf32, #tpu.memory_space<vmem>>, vector<8x16xf32>
    tpu.vector_store %arg12[%c0_29, %c0_30], %42 {strides = array<i32>} : memref<8x16xf32, #tpu.memory_space<vmem>>, vector<8x16xf32>,
    return
  }
  func.func @transform_0(%arg0: i32) -> (i32, i32) {
    %c0_i32 = arith.constant 0 : i32
    %c0_i32_0 = arith.constant 0 : i32
    return %arg0, %c0_i32 : i32, i32
  }
  func.func @transform_1(%arg0: i32) -> (i32, i32) {
    %c0_i32 = arith.constant 0 : i32
    %c0_i32_0 = arith.constant 0 : i32
    %c0_i32_1 = arith.constant 0 : i32
    return %c0_i32, %c0_i32_0 : i32, i32
  }
  func.func @transform_2(%arg0: i32) -> (i32, i32) {
    %c0_i32 = arith.constant 0 : i32
    %c0_i32_0 = arith.constant 0 : i32
    %c0_i32_1 = arith.constant 0 : i32
    return %c0_i32, %c0_i32_0 : i32, i32
  }
  func.func @transform_3(%arg0: i32) -> (i32, i32) {
    %c0_i32 = arith.constant 0 : i32
    %c0_i32_0 = arith.constant 0 : i32
    %c0_i32_1 = arith.constant 0 : i32
    return %c0_i32, %c0_i32_0 : i32, i32
  }
  func.func @transform_4(%arg0: i32) -> (i32, i32) {
    %c0_i32 = arith.constant 0 : i32
    %c0_i32_0 = arith.constant 0 : i32
    %c0_i32_1 = arith.constant 0 : i32
    return %c0_i32, %c0_i32_0 : i32, i32
  }
  func.func @transform_5(%arg0: i32) -> (i32, i32) {
    %c0_i32 = arith.constant 0 : i32
    %c0_i32_0 = arith.constant 0 : i32
    %c0_i32_1 = arith.constant 0 : i32
    return %c0_i32, %c0_i32_0 : i32, i32
  }
  func.func @transform_6(%arg0: i32) -> (i32, i32) {
    %c0_i32 = arith.constant 0 : i32
    %c0_i32_0 = arith.constant 0 : i32
    %c0_i32_1 = arith.constant 0 : i32
    return %c0_i32, %c0_i32_0 : i32, i32
  }
  func.func @transform_7(%arg0: i32) -> (i32, i32) {
    %c0_i32 = arith.constant 0 : i32
    %c0_i32_0 = arith.constant 0 : i32
    %c0_i32_1 = arith.constant 0 : i32
    return %c0_i32, %c0_i32_0 : i32, i32
  }
  func.func @transform_8(%arg0: i32) -> (i32, i32) {
    %c0_i32 = arith.constant 0 : i32
    %c0_i32_0 = arith.constant 0 : i32
    %c0_i32_1 = arith.constant 0 : i32
    return %c0_i32, %c0_i32_0 : i32, i32
  }
  func.func @transform_9(%arg0: i32) -> (i32, i32) {
    %c0_i32 = arith.constant 0 : i32
    %c0_i32_0 = arith.constant 0 : i32
    %c0_i32_1 = arith.constant 0 : i32
    return %c0_i32, %c0_i32_0 : i32, i32
  }
  func.func @transform_10(%arg0: i32) -> (i32, i32) {
    %c0_i32 = arith.constant 0 : i32
    %c0_i32_0 = arith.constant 0 : i32
    %c0_i32_1 = arith.constant 0 : i32
    return %c0_i32, %c0_i32_0 : i32, i32
  }
  func.func @transform_11(%arg0: i32) -> (i32, i32) {
    %c0_i32 = arith.constant 0 : i32
    %c0_i32_0 = arith.constant 0 : i32
    return %arg0, %c0_i32 : i32, i32
  }
}

</mosaic_0001>

<bundles_post_ra>
// kernel: tpu_custom_call.1
= control target key start
LH: loop header
LB: loop body
LE: loop exit
PB: predicated region body
PF: predicated region fallthrough
CT: control target
= control target key end

     0   :  { %16 = vsyncpa [#allocation3], 0  ;;  %s1120_s0 = inlined_call_operand.hbm [shape: f32[8,32], index: 0, kind: input, shape index: {}]   ;;  %s1121_s1 = inlined_call_operand.vmem [shape: bf16[32,64], index: 1, kind: input, shape index: {}]   ;;  %s1122_s2 = inlined_call_operand.vmem [shape: bf16[1,64], index: 2, kind: input, shape index: {}]   ;;  %s1123_s3 = inlined_call_operand.hbm [shape: bf16[64,128], index: 3, kind: input, shape index: {}]   ;;  %s1124_s4 = inlined_call_operand.vmem [shape: bf16[1,128], index: 4, kind: input, shape index: {}]   ;;  %s1125_s5 = inlined_call_operand.vmem [shape: bf16[128,128], index: 5, kind: input, shape index: {}]   ;;  %s1126_s6 = inlined_call_operand.vmem [shape: bf16[1,128], index: 6, kind: input, shape index: {}]   ;;  %s1127_s7 = inlined_call_operand.hbm [shape: bf16[128,128], index: 7, kind: input, shape index: {}]   ;;  %s1128_s8 = inlined_call_operand.vmem [shape: bf16[1,128], index: 8, kind: input, shape index: {}]   ;;  %s1129_s9 = inlined_call_operand.vmem [shape: bf16[128,16], index: 9, kind: input, shape index: {}]   ;;  %s1130_s10 = inlined_call_operand.vmem [shape: f32[1,16], index: 10, kind: input, shape index: {}]   ;;  %s1131_s11 = inlined_call_operand.hbm [shape: f32[8,16], index: 11, kind: output, shape index: {}]  }
   0x1   :  { %17 = vsyncpa [#allocation6], 0 }
   0x2   :  { %18 = vsyncpa [#allocation4], 0  ;;  %s883_s17 = smov [#allocation5]   ;;  %s789_s21 = scalar_lea.hbm %s1123_s3, 512 }
   0x3   :  { %s38_s18 = sshll.u32 %s883_s17, 4  ;;  %p790_p0 = scmp.ne.s32.totalorder %s1123_s3, %s789_s21  ;;  %s39_s18 = int_to_ptr.vmem [resolvable:$true] %s38_s18 }
   0x4   :  { %p793_p1 = scmp.lt.u32.totalorder %s789_s21, %s1123_s3 }
   0x6   :  { %p795_p2 = pnand %p793_p1, %p790_p0 }
   0x8   :  { %798 = shalt.err (!%p795_p2)
}
   0x9   :  { %s799_s26 = scalar_lea.vmem %s39_s18, 512  ;;  %p804_p4 = scmp.lt.s32.totalorder %s39_s18, %s39_s18 }
   0xa   :  { %p800_p3 = scmp.ne.s32.totalorder %s39_s18, %s799_s26  ;;  %p805_p5 = scmp.lt.s32.totalorder %s799_s26, %s799_s26 }
   0xc   :  { %p806_p6 = por %p805_p5, %p804_p4 }
   0xe   :  { %p807_p7 = pnand %p806_p6, %p800_p3 }
  0x10   :  { %810 = shalt.err (!%p807_p7)
}
  0x11   :  { %s884_s27 = smov 64   ;;  %s885_s28 = smov 4  }
  0x12   :  { %44 = dma.hbm_to_vmem [thread:$0]  %s1123_s3, 512, %s39_s18, [#allocation6], %s884_s27, %s884_s27, %s885_s28  }
  0x13   :  { %s886_s12 = smov [#allocation2]   ;;  %s887_s14 = smov [#allocation7]  }
  0x14   :  { %s25_s13 = sshll.u32 %s886_s12, 4  ;;  %s56_s15 = sshll.u32 %s887_s14, 4  ;;  %s26_s13 = int_to_ptr.vmem [resolvable:$true] %s25_s13  ;;  %s57_s15 = int_to_ptr.vmem [resolvable:$true] %s56_s15 }
  0x15   :  { %s811_s19 = scalar_lea.hbm %s1120_s0, 128 }
  0x16   :  { %p812_p8 = scmp.ne.s32.totalorder %s1120_s0, %s811_s19  ;;  %p815_p9 = scmp.lt.u32.totalorder %s811_s19, %s1120_s0 }
  0x18   :  { %p817_p10 = pnand %p815_p9, %p812_p8 }
  0x1a   :  { %820 = shalt.err (!%p817_p10)
}
  0x1b   :  { %s821_s3 = scalar_lea.vmem %s26_s13, 128  ;;  %p826_p12 = scmp.lt.s32.totalorder %s26_s13, %s26_s13 }
  0x1c   :  { %p822_p11 = scmp.ne.s32.totalorder %s26_s13, %s821_s3  ;;  %p827_p13 = scmp.lt.s32.totalorder %s821_s3, %s821_s3 }
  0x1e   :  { %p828_p0 = por %p827_p13, %p826_p12 }
  0x20   :  { %p829_p1 = pnand %p828_p0, %p822_p11 }
  0x22   :  { %832 = shalt.err (!%p829_p1)
}
  0x23   :  { %28 = dma.hbm_to_vmem [thread:$0]  %s1120_s0, 128, %s26_s13, [#allocation3]  }
  0x24   :  { %s833_s29 = scalar_lea.hbm %s1127_s7, 1024 }
  0x25   :  { %p834_p2 = scmp.ne.s32.totalorder %s1127_s7, %s833_s29  ;;  %p837_p3 = scmp.lt.u32.totalorder %s833_s29, %s1127_s7 }
  0x27   :  { %p839_p4 = pnand %p837_p3, %p834_p2 }
  0x29   :  { %842 = shalt.err (!%p839_p4)
}
  0x2a   :  { %s843_s17 = scalar_lea.vmem %s57_s15, 1024  ;;  %p848_p6 = scmp.lt.s32.totalorder %s57_s15, %s57_s15 }
  0x2b   :  { %p844_p5 = scmp.ne.s32.totalorder %s57_s15, %s843_s17  ;;  %p849_p7 = scmp.lt.s32.totalorder %s843_s17, %s843_s17 }
  0x2d   :  { %p850_p8 = por %p849_p7, %p848_p6 }
  0x2f   :  { %p851_p9 = pnand %p850_p8, %p844_p5 }
  0x31   :  { %854 = shalt.err (!%p851_p9)
}
  0x32   :  { %62 = dma.hbm_to_vmem [thread:$0]  %s1127_s7, 1024, %s57_s15, [#allocation6], %s884_s27, %s884_s27, %s885_s28  }
  0x33   :  { %877 = dma.done.wait [#allocation3], 128  }
  0x34   :  { %878 = vsyncadd [#allocation3], 4294967168 }
  0x35   :  { %879 = dma.done.wait [#allocation6], 1536  }
  0x36   :  { %880 = vsyncadd [#allocation6], 4294965760  ;;  %v888_v0 = vmov 0.0   ;;  %vm889_vm0 = vmmov 0   ;;  %v759_v1 = vld [vmem:[%s1121_s1] sm:$0xff]   ;;  %v760_v2 = vld [vmem:[%s1121_s1 + $0x8] sm:$0xff]   ;;  %v147_v15 = vlaneseq }
  0x37   :  { %671 = vmatprep.subr.bf16.mxu1 %v888_v0  ;;  %675 = vmatprep.mubr.msk.bf16.mxu1 %vm889_vm0, %v888_v0  ;;  %v80_v3 = vld [vmem:[#allocation2] sm:$0xff]  ;;  %vm98_vm1 = vcmask 261120   ;;  %v761_v4 = vld [vmem:[#allocation5] sm:$0xff]   ;;  %v762_v6 = vld [vmem:[#allocation5 + $0x8] sm:$0xff]   ;;  %vm186_vm2 = vcmask 523264   ;;  %vm585_vm3 = vcmask 130048  }
  0x38   :  { %691 = vmatprep.subr.bf16.mxu0 %v888_v0  ;;  %707 = vmatprep.mubr.msk.bf16.mxu0 %vm889_vm0, %v888_v0  ;;  %v81_v5 = vpack.c.bf16 %v80_v3, %v80_v3  ;;  %v763_v7 = vld [vmem:[#allocation5 + $0x10] sm:$0xff]   ;;  %v764_v8 = vld [vmem:[#allocation5 + $0x18] sm:$0xff]   ;;  %v766_v10 = vld [vmem:[%s1125_s5 + $0x8] sm:$0xff]   ;;  %v148_v16 = vshrl.u32 %v147_v15, 7 }
  0x39   :  { %672 = vmatpush3.bf16.msra.mxu1 %v759_v1  ;;  %v765_v9 = vld [vmem:[%s1125_s5] sm:$0xff]   ;;  %v767_v11 = vld [vmem:[%s1125_s5 + $0x10] sm:$0xff]   ;;  %v768_v12 = vld [vmem:[%s1125_s5 + $0x18] sm:$0xff]  }
  0x3a   :  { %673 = vmatprep.subr.bf16.mxu1 %v888_v0  ;;  %692 = vmatpush3.bf16.msra.mxu0 %v765_v9  ;;  %v769_v13 = vld [vmem:[%s1125_s5 + $0x20] sm:$0xff]   ;;  %v770_v14 = vld [vmem:[%s1125_s5 + $0x28] sm:$0xff]   ;;  %v1040_v19 = vsub.s32 0, %v148_v16  ;;  %v771_v29 = vld [vmem:[%s1125_s5 + $0x30] sm:$0xff]  }
  0x3b   :  { %693 = vmatprep.subr.bf16.mxu0 %v888_v0  ;;  %v143_v17 = vld [vmem:[%s1122_s2] sm:$0x1]  ;;  %v772_v30 = vld [vmem:[%s1125_s5 + $0x38] sm:$0xff]   ;;  %v773_v31 = vld [vmem:[#allocation7] sm:$0xff]  }
  0x3c   :  { %v145_v18 = vpack.i.b16 %v143_v17, %v143_v17  ;;  %v774_v32 = vld [vmem:[#allocation7 + $0x8] sm:$0xff]   ;;  %v775_v33 = vld [vmem:[#allocation7 + $0x10] sm:$0xff]   ;;  %v776_v34 = vld [vmem:[#allocation7 + $0x18] sm:$0xff]  }
  0x3d   :  { %674 = vmatpush3.bf16.msra.mxu1 %v760_v2  ;;  %v777_v35 = vld [vmem:[#allocation7 + $0x20] sm:$0xff]   ;;  %v778_v36 = vld [vmem:[#allocation7 + $0x28] sm:$0xff]   ;;  %v231_v37 = vld [vmem:[%s1124_s4] sm:$0x1] }
  0x3e   :  { %679 = vmatprep.subr.bf16.mxu1 %v888_v0  ;;  %694 = vmatpush3.bf16.msra.mxu0 %v766_v10  ;;  %v150_v20 = vrot.slane %v145_v18, %v1040_v19  ;;  %v233_v38 = vpack.i.b16 %v231_v37, %v231_v37  ;;  %v779_v48 = vld [vmem:[#allocation7 + $0x30] sm:$0xff]   ;;  %v780_v49 = vld [vmem:[#allocation7 + $0x38] sm:$0xff]   ;;  %v782_v51 = vld [vmem:[%s1129_s9 + $0x8] sm:$0xff]  }
  0x3f   :  { %695 = vmatprep.subr.bf16.mxu0 %v888_v0  ;;  %v781_v50 = vld [vmem:[%s1129_s9] sm:$0xff]   ;;  %v783_v52 = vld [vmem:[%s1129_s9 + $0x10] sm:$0xff]   ;;  %v784_v53 = vld [vmem:[%s1129_s9 + $0x18] sm:$0xff]  }
  0x40   :  { %676 = vmatmul.mubr.msk.bf16.vlgmr.msra.gmra.mrb[0].mxu1 %vm98_vm1, %v81_v5  ;;  %v238_v39 = vrot.slane %v233_v38, %v1040_v19  ;;  %v785_v54 = vld [vmem:[%s1129_s9 + $0x20] sm:$0xff]   ;;  %v786_v55 = vld [vmem:[%s1129_s9 + $0x28] sm:$0xff]   ;;  %v788_v5 = vld [vmem:[%s1129_s9 + $0x38] sm:$0xff]  }
  0x41   :  { %680 = vmatpush3.bf16.msra.mxu1 %v761_v4  ;;  %687 = vmatprep.mubr.msk.bf16.mxu1 %vm889_vm0, %v888_v0  ;;  %v347_v56 = vld [vmem:[%s1126_s6] sm:$0x1]  ;;  %v787_v4 = vld [vmem:[%s1129_s9 + $0x30] sm:$0xff]   ;;  %s890_s9 = smov [#allocation8]  }
  0x42   :  { %681 = vmatprep.subr.bf16.mxu1 %v888_v0  ;;  %696 = vmatpush3.bf16.msra.mxu0 %v767_v11  ;;  %v349_v57 = vpack.i.b16 %v347_v56, %v347_v56  ;;  %v627_v16 = vld [vmem:[%s1130_s10] ss:$0 sm:$0xff]  ;;  %s593_s2 = sshll.u32 %s890_s9, 4  ;;  %s594_s2 = int_to_ptr.vmem [resolvable:$true] %s593_s2 }
  0x43   :  { %697 = vmatprep.subr.bf16.mxu0 %v888_v0  ;;  %p860_p11 = scmp.lt.s32.totalorder %s594_s2, %s594_s2 }
  0x44   :  { %v354_v58 = vrot.slane %v349_v57, %v1040_v19 }
  0x45   :  { %682 = vmatpush3.bf16.msra.mxu1 %v762_v6  ;;  %v463_v6 = vld [vmem:[%s1128_s8] sm:$0x1]  ;;  %s855_s8 = scalar_lea.vmem %s594_s2, 128 }
  0x46   :  { %683 = vmatprep.subr.bf16.mxu1 %v888_v0  ;;  %698 = vmatpush3.bf16.msra.mxu0 %v768_v12  ;;  %p856_p10 = scmp.ne.s32.totalorder %s594_s2, %s855_s8  ;;  %p861_p12 = scmp.lt.s32.totalorder %s855_s8, %s855_s8 }
  0x47   :  { %699 = vmatprep.subr.bf16.mxu0 %v888_v0 }
  0x48   :  { %p862_p13 = por %p861_p12, %p860_p11 }
  0x49   :  { %684 = vmatpush3.bf16.msra.mxu1 %v763_v7  ;;  %v465_v7 = vpack.i.b16 %v463_v6, %v463_v6 }
  0x4a   :  { %685 = vmatprep.subr.bf16.mxu1 %v888_v0  ;;  %700 = vmatpush3.bf16.msra.mxu0 %v769_v13  ;;  %p863_p0 = pnand %p862_p13, %p856_p10 }
  0x4b   :  { %701 = vmatprep.subr.bf16.mxu0 %v888_v0 }
  0x4d   :  { %686 = vmatpush3.bf16.msra.mxu1 %v764_v8  ;;  %v470_v8 = vrot.slane %v465_v7, %v1040_v19 }
  0x4e   :  { %711 = vmatprep.subr.bf16.mxu1 %v888_v0  ;;  %702 = vmatpush3.bf16.msra.mxu0 %v770_v14 }
  0x4f   :  { %703 = vmatprep.subr.bf16.mxu0 %v888_v0 }
  0x52   :  { %704 = vmatpush3.bf16.msra.mxu0 %v771_v29 }
  0x53   :  { %705 = vmatprep.subr.bf16.mxu0 %v888_v0 }
  0x56   :  { %706 = vmatpush3.bf16.msra.mxu0 %v772_v30 }
  0x57   :  { %731 = vmatprep.subr.bf16.mxu0 %v888_v0 }
 0x113   :  { %v136_v21 = vpop.f32.mrb[0].mxu1 }
 0x114   :  { %v142_v22 = vpack.c.bf16 %v136_v21, %v136_v21  ;;  %v677_v23 = vpop.f32.mrb[1].mxu1 }
 0x115   :  { %v139_v24 = vpop.f32.mrb[2].mxu1 }
 0x116   :  { %v151_v25 = vadd.bf16 %v150_v20, %v142_v22  ;;  %v678_v26 = vpop.f32.mrb[3].mxu1 }
 0x118   :  { %v152_v27 = vmul.bf16 1009007652, %v151_v25 }
 0x11a   :  { %v153_v28 = vmax.bf16 %v152_v27, %v151_v25 }
 0x11c   :  { %688 = vmatmul.mubr.msk.bf16.vlgmr.msra.gmra.mrb[4].mxu1 %vm186_vm2, %v153_v28 }
 0x11d   :  { %727 = vmatprep.mubr.msk.bf16.mxu1 %vm889_vm0, %v888_v0  ;;  %712 = vmatpush3.bf16.msra.mxu1 %v773_v31 }
 0x11e   :  { %713 = vmatprep.subr.bf16.mxu1 %v888_v0 }
 0x121   :  { %714 = vmatpush3.bf16.msra.mxu1 %v774_v32 }
 0x122   :  { %715 = vmatprep.subr.bf16.mxu1 %v888_v0 }
 0x125   :  { %716 = vmatpush3.bf16.msra.mxu1 %v775_v33 }
 0x126   :  { %717 = vmatprep.subr.bf16.mxu1 %v888_v0 }
 0x129   :  { %718 = vmatpush3.bf16.msra.mxu1 %v776_v34 }
 0x12a   :  { %719 = vmatprep.subr.bf16.mxu1 %v888_v0 }
 0x12d   :  { %720 = vmatpush3.bf16.msra.mxu1 %v777_v35 }
 0x12e   :  { %721 = vmatprep.subr.bf16.mxu1 %v888_v0 }
 0x131   :  { %722 = vmatpush3.bf16.msra.mxu1 %v778_v36 }
 0x132   :  { %723 = vmatprep.subr.bf16.mxu1 %v888_v0 }
 0x135   :  { %724 = vmatpush3.bf16.msra.mxu1 %v779_v48 }
 0x136   :  { %725 = vmatprep.subr.bf16.mxu1 %v888_v0 }
 0x139   :  { %726 = vmatpush3.bf16.msra.mxu1 %v780_v49 }
 0x1ef   :  { %v224_v40 = vpop.f32.mrb[4].mxu1 }
 0x1f0   :  { %v230_v41 = vpack.c.bf16 %v224_v40, %v224_v40  ;;  %v689_v42 = vpop.f32.mrb[5].mxu1 }
 0x1f1   :  { %v227_v43 = vpop.f32.mrb[6].mxu1 }
 0x1f2   :  { %v239_v44 = vadd.bf16 %v238_v39, %v230_v41  ;;  %v690_v45 = vpop.f32.mrb[7].mxu1 }
 0x1f4   :  { %v240_v46 = vmul.bf16 1009007652, %v239_v44 }
 0x1f6   :  { %v241_v47 = vmax.bf16 %v240_v46, %v239_v44 }
 0x1f8   :  { %708 = vmatmul.mubr.bf16.vlgmr.msra.gmra.mrb[0].mxu0 %v241_v47 }
 0x1f9   :  { %747 = vmatprep.mubr.msk.bf16.mxu0 %vm889_vm0, %v888_v0  ;;  %732 = vmatpush3.bf16.msra.mxu0 %v781_v50 }
 0x1fa   :  { %733 = vmatprep.subr.bf16.mxu0 %v888_v0 }
 0x1fd   :  { %734 = vmatpush3.bf16.msra.mxu0 %v782_v51 }
 0x1fe   :  { %735 = vmatprep.subr.bf16.mxu0 %v888_v0 }
 0x201   :  { %736 = vmatpush3.bf16.msra.mxu0 %v783_v52 }
 0x202   :  { %737 = vmatprep.subr.bf16.mxu0 %v888_v0 }
 0x205   :  { %738 = vmatpush3.bf16.msra.mxu0 %v784_v53 }
 0x206   :  { %739 = vmatprep.subr.bf16.mxu0 %v888_v0 }
 0x209   :  { %740 = vmatpush3.bf16.msra.mxu0 %v785_v54 }
 0x20a   :  { %741 = vmatprep.subr.bf16.mxu0 %v888_v0 }
 0x20d   :  { %742 = vmatpush3.bf16.msra.mxu0 %v786_v55 }
 0x20e   :  { %743 = vmatprep.subr.bf16.mxu0 %v888_v0 }
 0x211   :  { %744 = vmatpush3.bf16.msra.mxu0 %v787_v4 }
 0x212   :  { %745 = vmatprep.subr.bf16.mxu0 %v888_v0 }
 0x215   :  { %746 = vmatpush3.bf16.msra.mxu0 %v788_v5 }
 0x2cb   :  { %v340_v59 = vpop.f32.mrb[0].mxu0 }
 0x2cc   :  { %v346_v60 = vpack.c.bf16 %v340_v59, %v340_v59  ;;  %v709_v61 = vpop.f32.mrb[1].mxu0 }
 0x2cd   :  { %v343_v62 = vpop.f32.mrb[2].mxu0 }
 0x2ce   :  { %v355_v63 = vadd.bf16 %v354_v58, %v346_v60  ;;  %v710_v1 = vpop.f32.mrb[3].mxu0 }
 0x2d0   :  { %v356_v2 = vmul.bf16 1009007652, %v355_v63 }
 0x2d2   :  { %v357_v3 = vmax.bf16 %v356_v2, %v355_v63 }
 0x2d4   :  { %728 = vmatmul.mubr.bf16.vlgmr.msra.gmra.mrb[8].mxu1 %v357_v3 }
 0x3a7   :  { %v456_v9 = vpop.f32.mrb[8].mxu1 }
 0x3a8   :  { %v462_v10 = vpack.c.bf16 %v456_v9, %v456_v9  ;;  %v729_v11 = vpop.f32.mrb[9].mxu1 }
 0x3a9   :  { %v459_v12 = vpop.f32.mrb[10].mxu1 }
 0x3aa   :  { %v471_v13 = vadd.bf16 %v470_v8, %v462_v10  ;;  %v730_v14 = vpop.f32.mrb[11].mxu1 }
 0x3ac   :  { %v472_v15 = vmul.bf16 1009007652, %v471_v13 }
 0x3ae   :  { %v473_v0 = vmax.bf16 %v472_v15, %v471_v13 }
 0x3b0   :  { %748 = vmatmul.mubr.bf16.vlgmr.msra.gmra.mrb[4].mxu0 %v473_v0 }
 0x483   :  { %v579_v17 = vpop.f32.mrb[4].mxu0 }
 0x484   :  { %v580_v18 = vadd.f32 %v627_v16, %v579_v17  ;;  %v749_v20 = vpop.f32.mrb[5].mxu0 }
 0x485   :  { %v582_v19 = vpop.f32.mrb[6].mxu0 }
 0x486   :  { %v750_v21 = vpop.f32.mrb[7].mxu0  ;;  %586 = vst.msk [vmem:[#allocation8] sm:$0xff] %vm585_vm3, %v580_v18 }
 0x487   :  { %866 = shalt.err (!%p863_p0)
}
 0x488   :  { %s867_s10 = scalar_lea.hbm %s1131_s11, 128 }
 0x489   :  { %p868_p1 = scmp.ne.s32.totalorder %s1131_s11, %s867_s10  ;;  %p871_p2 = scmp.lt.u32.totalorder %s867_s10, %s1131_s11 }
 0x48b   :  { %p873_p3 = pnand %p871_p2, %p868_p1 }
 0x48d   :  { %876 = shalt.err (!%p873_p3)
}
 0x48e   :  { %596 = dma.vmem_to_hbm [thread:$0]  %s594_s2, 128, %s1131_s11, [#allocation4]  }
 0x48f   :  { %881 = dma.done.wait [#allocation4], 128  }
 0x490   :  { %882 = vsyncadd [#allocation4], 4294967168 }
 0x491   :  { %600 = vsyncpa [#allocation3], 1 }
 0x492   :  { %601 = vsyncpa [#allocation6], 1 }
 0x493   :  { %602 = vsyncpa [#allocation4], 1 }

</bundles_post_ra>
